<compile_context>
chip_gen: v7x
topology: tpu7x:2x2x1
jax: 0.10.0
libtpu: 0.0.40
codegen_flags: <defaults>
</compile_context>

<pallas_src>
import functools

import numpy as np
import jax
import jax.numpy as jnp
from jax.experimental import pallas as pl
from jax.experimental.pallas import tpu as pltpu


# ----------------------------------------------------------------------------
# Fused Pallas kernel: encoder affine + K block-diag decoder heads + cur add
# ----------------------------------------------------------------------------
def _mart_fused_kernel(add_cur,
                       xa_ref, xr_ref,
                       wa_ref, wr_ref, be_ref,
                       w1_ref, b1_ref, w2_ref, b2_ref, w3_ref, b3_ref,
                       sel_ref, o_ref):
    """One row-tile of the full MART forward.

    xa/xr : (tm, 2L)  flattened abs / rel trajectories
    wa/wr : (2L, D)   folded encoder weights (input_fc -> PE-concat fc -> input_fc2)
    w1    : (D, K*dh) per-head first layers, 3x-concat fold already applied,
                       merged along lanes
    w2    : (K*dh, K*dh/2)   block-diagonal
    w3    : (K*dh/2, K*2F)   block-diagonal -> wide output slab
    sel   : (2L, K*2F) constant 0/1 selector adding cur_pos (last 2 abs cols)
    """
    xa = xa_ref[...]
    # Encoder (exact eval-mode fold; no nonlinearity between the 3 Linears).
    n = (jnp.dot(xa, wa_ref[...], preferred_element_type=jnp.float32)
         + jnp.dot(xr_ref[...], wr_ref[...], preferred_element_type=jnp.float32)
         + be_ref[...])
    # All K heads as 3 lane-merged (block-diagonal) dots; ReLU per merged vreg.
    h = jnp.maximum(
        jnp.dot(n, w1_ref[...], preferred_element_type=jnp.float32) + b1_ref[...], 0.0)
    h = jnp.maximum(
        jnp.dot(h, w2_ref[...], preferred_element_type=jnp.float32) + b2_ref[...], 0.0)
    y = jnp.dot(h, w3_ref[...], preferred_element_type=jnp.float32) + b3_ref[...]
    if add_cur:
        # outputs += cur_location, done as an MXU dot with a constant selector.
        y = y + jnp.dot(xa, sel_ref[...], preferred_element_type=jnp.float32)
    o_ref[...] = y.astype(o_ref.dtype)


def mart_fused_pallas(xa, xr, kp, add_cur=True, tm=None):
    """Whole MART forward in ONE pallas_call.  xa, xr: (M, 2L) -> (M, K*2F).

    Default: a single whole-array block (grid=(1,)) -- this workload is
    launch-overhead bound.  For production-scale M pass tm (multiple of 8
    dividing M, aim for >=2 grid steps on v7x); the row axis is "parallel".
    # TODO(synk): for large M also pad the K*2F=16 output slab to 128 lanes
    # (unmasked vst); negligible at BN=8 so not done here.
    """
    M, Din = xa.shape
    D = kp["w_abs"].shape[1]
    H1 = kp["w1"].shape[1]
    H2 = kp["w2"].shape[1]
    NW = kp["w3"].shape[1]
    if tm is None or tm >= M:
        tm = M
    assert M % tm == 0, "pick tm dividing M (no padding path by design)"

    def full(shape):
        return pl.BlockSpec(shape, lambda i, s=shape: (0,) * len(s))

    return pl.pallas_call(
        functools.partial(_mart_fused_kernel, add_cur),
        out_shape=jax.ShapeDtypeStruct((M, NW), jnp.float32),
        grid=(M // tm,),
        in_specs=[
            pl.BlockSpec((tm, Din), lambda i: (i, 0)),   # x_abs rows
            pl.BlockSpec((tm, Din), lambda i: (i, 0)),   # x_rel rows
            full((Din, D)), full((Din, D)), full((1, D)),
            full((D, H1)), full((1, H1)),
            full((H1, H2)), full((1, H2)),
            full((H2, NW)), full((1, NW)),
            full((Din, NW)),
        ],
        out_specs=pl.BlockSpec((tm, NW), lambda i: (i, 0)),
        compiler_params=pltpu.CompilerParams(dimension_semantics=("parallel",)),
    )(xa, xr, kp["w_abs"], kp["w_rel"], kp["b_enc"],
      kp["w1"], kp["b1"], kp["w2"], kp["b2"], kp["w3"], kp["b3"], kp["cursel"])


# ----------------------------------------------------------------------------
# Parameter setup (deterministic, PyTorch nn.Linear-style init)
# ----------------------------------------------------------------------------
def init_linear(key, fan_in, fan_out):
    kw, kb = jax.random.split(key)
    bound = 1.0 / np.sqrt(fan_in)
    w = jax.random.uniform(kw, (fan_in, fan_out), jnp.float32, -bound, bound)
    b = jax.random.uniform(kb, (fan_out,), jnp.float32, -bound, bound)
    return w, b


def build_pos_enc(max_len, d_model):
    position = jnp.arange(max_len, dtype=jnp.float32)[:, None]
    div_term = jnp.exp(
        jnp.arange(0, d_model, 2, dtype=jnp.float32) * (-np.log(10000.0) / d_model))
    pe_sin = jnp.sin(position * div_term)
    pe_cos = jnp.cos(position * div_term)
    pe = jnp.stack([pe_sin, pe_cos], axis=-1).reshape(max_len, d_model)
    return pe                                       # pe[:, 0::2]=sin, pe[:, 1::2]=cos


def init_mart_params(key, args):
    D = args["model_dim"]
    L = args["past_length"]
    F = args["future_length"]
    dh = args["decoder_hidden_dim"]
    multiplier = len(args["hyper_scales"]) + 1       # = 3
    in_dim = len(args["inputs"])                     # = 4

    params = {}
    params["fc_w"], params["fc_b"] = init_linear(jax.random.fold_in(key, 0), in_dim, D)
    params["pos_w"], params["pos_b"] = init_linear(jax.random.fold_in(key, 1), 2 * D, D)
    params["fc2_w"], params["fc2_b"] = init_linear(jax.random.fold_in(key, 2), D * L, D)
    params["pe"] = build_pos_enc(200, D)
    heads = []
    for i in range(args["sample_k"]):
        hk = jax.random.fold_in(key, 100 + i)
        w1, b1 = init_linear(jax.random.fold_in(hk, 0), D * multiplier, dh)
        w2, b2 = init_linear(jax.random.fold_in(hk, 1), dh, dh // 2)
        w3, b3 = init_linear(jax.random.fold_in(hk, 2), dh // 2, F * 2)
        heads.append((w1, b1, w2, b2, w3, b3))
    params["heads"] = heads
    return params


# ----------------------------------------------------------------------------
# One-time parameter preprocessing (HOISTED out of the forward path)
# ----------------------------------------------------------------------------
def _block_diag(mats):
    total_cols = sum(m.shape[1] for m in mats)
    rows, off = [], 0
    for m in mats:
        rows.append(jnp.pad(m, ((0, 0), (off, total_cols - off - m.shape[1]))))
        off += m.shape[1]
    return jnp.concatenate(rows, axis=0)


def prepare_mart_params(params, args):
    """Fold / merge all MART weights into kernel-ready arrays.  Runs ONCE.

    Encoder fold is exact in eval mode: dropout = identity and there is no
    nonlinearity between input_fc, the PE-concat Linear, and input_fc2, so
        n_initial = [x_abs|x_rel flattened] @ W_eff + b_eff.
    Head fold: n_pair = n_group = n_initial (RT/HRT pass-through), so
        w1_eff = w1[:D] + w1[D:2D] + w1[2D:3D],
    and the K heads are merged along lanes with block-diagonal w2 / w3.
    """
    D = args["model_dim"]
    L = args["past_length"]
    F = args["future_length"]
    assert args["inputs"] == ["pos_x", "pos_y", "vel_x", "vel_y"]

    # --- encoder: input_fc -> PositionalAgentEncoding(concat) -> input_fc2 ---
    fc_w, fc_b = params["fc_w"], params["fc_b"]          # (4, D), (D,)
    pos_w, pos_b = params["pos_w"], params["pos_b"]      # (2D, D), (D,)
    fc2_w, fc2_b = params["fc2_w"], params["fc2_b"]      # (L*D, D), (D,)
    pe = params["pe"][:L]                                # (L, D)
    pos_w_x, pos_w_pe = pos_w[:D], pos_w[D:]             # concat order is [x, pe]
    A = fc_w @ pos_w_x                                   # (4, D)
    c = fc_b @ pos_w_x + pe @ pos_w_pe + pos_b           # (L, D)
    fc2_w_r = fc2_w.reshape(L, D, D)                     # (t, D_in, D_out)
    W_eff = jnp.einsum("ki,tio->tko", A, fc2_w_r)        # (L, 4, D)
    b_eff = jnp.einsum("ti,tio->o", c, fc2_w_r) + fc2_b  # (D,)
    # Split per-time [pos_x,pos_y | vel_x,vel_y] halves so the kernel consumes
    # x_abs / x_rel reshaped views directly (no host-side concat of inputs).
    W_abs = W_eff[:, 0:2, :].reshape(L * 2, D)
    W_rel = W_eff[:, 2:4, :].reshape(L * 2, D)

    # --- decoder heads: 3x-concat fold + lane merge (block-diagonal) ---
    NO = 2 * F
    w1m, b1m, w2m, b2m, w3m, b3m = [], [], [], [], [], []
    for (w1, b1, w2, b2, w3, b3) in params["heads"]:
        w1m.append(w1[:D] + w1[D:2 * D] + w1[2 * D:])     # n_pair = n_group = n_initial
        b1m.append(b1)
        w2m.append(w2)
        b2m.append(b2)
        w3m.append(w3)
        b3m.append(b3)
    W1 = jnp.concatenate(w1m, axis=1)                     # (D, K*dh)
    B1 = jnp.concatenate(b1m)[None, :]                    # (1, K*dh)
    W2 = _block_diag(w2m)                                 # (K*dh, K*dh//2)
    B2 = jnp.concatenate(b2m)[None, :]
    W3 = _block_diag(w3m)                                 # (K*dh//2, K*2F)
    B3 = jnp.concatenate(b3m)[None, :]

    # --- cur-location selector: lane j of the wide slab is (f, coord=j%2) of
    # some head; it receives x_abs's last-timestep column 2L-2 + (j%2). ---
    K = len(params["heads"])
    sel = np.zeros((L * 2, K * NO), np.float32)
    sel[L * 2 - 2, 0::2] = 1.0                            # cur_x -> even lanes
    sel[L * 2 - 1, 1::2] = 1.0                            # cur_y -> odd lanes
    return {
        "w_abs": W_abs, "w_rel": W_rel, "b_enc": b_eff[None, :],
        "w1": W1, "b1": B1, "w2": W2, "b2": B2, "w3": W3, "b3": B3,
        "cursel": jnp.asarray(sel),
    }


# ----------------------------------------------------------------------------
# MART forward: reshape views only, then ONE fused pallas_call
# ----------------------------------------------------------------------------
def mart_forward(prepped, x_abs, x_rel, args):
    B, N, L, _ = x_abs.shape
    F = args["future_length"]
    K = args["sample_k"]
    BN = B * N
    xa = x_abs.reshape(BN, L * 2)       # contiguous view
    xr = x_rel.reshape(BN, L * 2)
    # TODO(synk): RT / HRT relational encoders (RT, RTNoEdgeInit, HRT,
    # HRTNoEdgeInit) are not defined in the reference module; identity
    # pass-through for n_pair / n_group (already folded into w1 above).
    out = mart_fused_pallas(xa, xr, prepped, add_cur=(not args["pred_rel"]))
    return out.reshape(B, N, K, F, 2)


# ----------------------------------------------------------------------------
# Pure-JAX reference (unfused, per the PyTorch module) for a correctness check
# ----------------------------------------------------------------------------
def mart_reference(params, x_abs, x_rel, args):
    D = args["model_dim"]
    L = args["past_length"]
    F = args["future_length"]
    K = args["sample_k"]
    B, N, _, _ = x_abs.shape
    BN = B * N
    hp = jax.lax.Precision.HIGHEST
    inp = jnp.concatenate([x_abs, x_rel], axis=-1).reshape(BN, L, -1)
    h = jnp.dot(inp, params["fc_w"], precision=hp) + params["fc_b"]
    pe = params["pe"][:L]
    h = jnp.concatenate([h, jnp.broadcast_to(pe, (BN, L, D))], axis=-1)
    h = jnp.dot(h, params["pos_w"], precision=hp) + params["pos_b"]
    n_initial = jnp.dot(h.reshape(BN, L * D), params["fc2_w"], precision=hp) + params["fc2_b"]
    n_final = jnp.concatenate([n_initial, n_initial, n_initial], axis=-1)
    cur = x_abs[:, :, -1, :].reshape(BN, 1, 2)
    outs = []
    for (w1, b1, w2, b2, w3, b3) in params["heads"]:
        y = jnp.maximum(jnp.dot(n_final, w1, precision=hp) + b1, 0.0)
        y = jnp.maximum(jnp.dot(y, w2, precision=hp) + b2, 0.0)
        y = jnp.dot(y, w3, precision=hp) + b3
        y = y.reshape(BN, F, 2)
        if not args["pred_rel"]:
            y = y + cur
        outs.append(y[:, None])
    return jnp.concatenate(outs, axis=1).reshape(B, N, K, F, 2)


# ----------------------------------------------------------------------------
if __name__ == "__main__":
    args = {
        "inputs": ["pos_x", "pos_y", "vel_x", "vel_y"],
        "model_dim": 32,
        "hidden_dim": 32,
        "past_length": 8,
        "future_length": 4,
        "num_heads": 4,
        "num_layers": 1,
        "sample_k": 2,
        "decoder_hidden_dim": 64,
        "hyper_scales": [2, 4],      # multiplier = 3
        "pred_rel": False,
        "dropout": 0.1,
    }

    key = jax.random.PRNGKey(0)
    kp, ka, kr = jax.random.split(key, 3)

    B, N, L = 2, 4, args["past_length"]
    x_abs = jax.random.normal(ka, (B, N, L, 2), dtype=jnp.float32)
    x_rel = jax.random.normal(kr, (B, N, L, 2), dtype=jnp.float32)

    params = init_mart_params(kp, args)
    prepped = prepare_mart_params(params, args)      # one-time, off the hot path

    out = mart_forward(prepped, x_abs, x_rel, args)
    out = jax.block_until_ready(out)
    assert out.shape == (B, N, args["sample_k"], args["future_length"], 2), out.shape

    ref = jax.block_until_ready(mart_reference(params, x_abs, x_rel, args))
    assert np.allclose(np.asarray(out), np.asarray(ref), atol=2e-2, rtol=2e-2), (
        float(np.max(np.abs(np.asarray(out) - np.asarray(ref)))))

    print("KERNEL_OK")
</pallas_src>

<mosaic_0001>
module attributes {stable_mosaic.version = 11 : i64} {
  func.func @_mart_fused_kernel(%arg0: i32, %arg1: memref<8x16xf32, #tpu.memory_space<vmem>>, %arg2: memref<8x16xf32, #tpu.memory_space<vmem>>, %arg3: memref<16x32xf32, #tpu.memory_space<vmem>>, %arg4: memref<16x32xf32, #tpu.memory_space<vmem>>, %arg5: memref<1x32xf32, #tpu.memory_space<vmem>>, %arg6: memref<32x128xf32, #tpu.memory_space<vmem>>, %arg7: memref<1x128xf32, #tpu.memory_space<vmem>>, %arg8: memref<128x64xf32, #tpu.memory_space<vmem>>, %arg9: memref<1x64xf32, #tpu.memory_space<vmem>>, %arg10: memref<64x16xf32, #tpu.memory_space<vmem>>, %arg11: memref<1x16xf32, #tpu.memory_space<vmem>>, %arg12: memref<16x16xf32, #tpu.memory_space<vmem>>, %arg13: memref<8x16xf32, #tpu.memory_space<vmem>>) attributes {dimension_semantics = [#tpu.dimension_semantics<parallel>], iteration_bounds = array<i64: 1>, scalar_prefetch = 0 : i64, scratch_operands = 0 : i64, tpu.core_type = #tpu.core_type<tc>, window_params = [{transform_indices = @transform_0, window_bounds = array<i64: 8, 16>}, {transform_indices = @transform_1, window_bounds = array<i64: 8, 16>}, {pipeline_mode = #tpu.pipeline_mode<synchronous>, transform_indices = @transform_2, window_bounds = array<i64: 16, 32>}, {pipeline_mode = #tpu.pipeline_mode<synchronous>, transform_indices = @transform_3, window_bounds = array<i64: 16, 32>}, {pipeline_mode = #tpu.pipeline_mode<synchronous>, transform_indices = @transform_4, window_bounds = array<i64: 1, 32>}, {pipeline_mode = #tpu.pipeline_mode<synchronous>, transform_indices = @transform_5, window_bounds = array<i64: 32, 128>}, {pipeline_mode = #tpu.pipeline_mode<synchronous>, transform_indices = @transform_6, window_bounds = array<i64: 1, 128>}, {pipeline_mode = #tpu.pipeline_mode<synchronous>, transform_indices = @transform_7, window_bounds = array<i64: 128, 64>}, {pipeline_mode = #tpu.pipeline_mode<synchronous>, transform_indices = @transform_8, window_bounds = array<i64: 1, 64>}, {pipeline_mode = #tpu.pipeline_mode<synchronous>, transform_indices = @transform_9, window_bounds = array<i64: 64, 16>}, {pipeline_mode = #tpu.pipeline_mode<synchronous>, transform_indices = @transform_10, window_bounds = array<i64: 1, 16>}, {pipeline_mode = #tpu.pipeline_mode<synchronous>, transform_indices = @transform_11, window_bounds = array<i64: 16, 16>}, {transform_indices = @transform_12, window_bounds = array<i64: 8, 16>}]} {
    %c0 = arith.constant 0 : index
    %c0_0 = arith.constant 0 : index
    %0 = vector.load %arg1[%c0, %c0_0] : memref<8x16xf32, #tpu.memory_space<vmem>>, vector<8x16xf32>
    %c0_1 = arith.constant 0 : index
    %c0_2 = arith.constant 0 : index
    %1 = vector.load %arg3[%c0_1, %c0_2] : memref<16x32xf32, #tpu.memory_space<vmem>>, vector<16x32xf32>
    %cst = arith.constant dense<0.000000e+00> : vector<8x32xf32>
    %2 = tpu.matmul %0, %1, %cst {dimension_numbers = #tpu.dot_dimension_numbers<[1], [0], [0], [1], [0, 0, 1, 1], [], []>} : vector<8x16xf32>, vector<16x32xf32>, vector<8x32xf32> -> vector<8x32xf32>
    %c0_3 = arith.constant 0 : index
    %c0_4 = arith.constant 0 : index
    %3 = vector.load %arg2[%c0_3, %c0_4] : memref<8x16xf32, #tpu.memory_space<vmem>>, vector<8x16xf32>
    %c0_5 = arith.constant 0 : index
    %c0_6 = arith.constant 0 : index
    %4 = vector.load %arg4[%c0_5, %c0_6] : memref<16x32xf32, #tpu.memory_space<vmem>>, vector<16x32xf32>
    %cst_7 = arith.constant dense<0.000000e+00> : vector<8x32xf32>
    %5 = tpu.matmul %3, %4, %cst_7 {dimension_numbers = #tpu.dot_dimension_numbers<[1], [0], [0], [1], [0, 0, 1, 1], [], []>} : vector<8x16xf32>, vector<16x32xf32>, vector<8x32xf32> -> vector<8x32xf32>
    %6 = arith.addf %2, %5 : vector<8x32xf32>
    %c0_8 = arith.constant 0 : index
    %c0_9 = arith.constant 0 : index
    %7 = vector.load %arg5[%c0_8, %c0_9] : memref<1x32xf32, #tpu.memory_space<vmem>>, vector<1x32xf32>
    %8 = vector.broadcast %7 : vector<1x32xf32> to vector<8x32xf32>
    %9 = arith.addf %6, %8 : vector<8x32xf32>
    %c0_10 = arith.constant 0 : index
    %c0_11 = arith.constant 0 : index
    %10 = vector.load %arg6[%c0_10, %c0_11] : memref<32x128xf32, #tpu.memory_space<vmem>>, vector<32x128xf32>
    %cst_12 = arith.constant dense<0.000000e+00> : vector<8x128xf32>
    %11 = tpu.matmul %9, %10, %cst_12 {dimension_numbers = #tpu.dot_dimension_numbers<[1], [0], [0], [1], [0, 0, 1, 1], [], []>} : vector<8x32xf32>, vector<32x128xf32>, vector<8x128xf32> -> vector<8x128xf32>
    %c0_13 = arith.constant 0 : index
    %c0_14 = arith.constant 0 : index
    %12 = vector.load %arg7[%c0_13, %c0_14] : memref<1x128xf32, #tpu.memory_space<vmem>>, vector<1x128xf32>
    %13 = vector.broadcast %12 : vector<1x128xf32> to vector<8x128xf32>
    %14 = arith.addf %11, %13 : vector<8x128xf32>
    %cst_15 = arith.constant 0.000000e+00 : f32
    %15 = vector.broadcast %cst_15 : f32 to vector<8x128xf32>
    %16 = arith.maximumf %14, %15 : vector<8x128xf32>
    %c0_16 = arith.constant 0 : index
    %c0_17 = arith.constant 0 : index
    %17 = vector.load %arg8[%c0_16, %c0_17] : memref<128x64xf32, #tpu.memory_space<vmem>>, vector<128x64xf32>
    %cst_18 = arith.constant dense<0.000000e+00> : vector<8x64xf32>
    %18 = tpu.matmul %16, %17, %cst_18 {dimension_numbers = #tpu.dot_dimension_numbers<[1], [0], [0], [1], [0, 0, 1, 1], [], []>} : vector<8x128xf32>, vector<128x64xf32>, vector<8x64xf32> -> vector<8x64xf32>
    %c0_19 = arith.constant 0 : index
    %c0_20 = arith.constant 0 : index
    %19 = vector.load %arg9[%c0_19, %c0_20] : memref<1x64xf32, #tpu.memory_space<vmem>>, vector<1x64xf32>
    %20 = vector.broadcast %19 : vector<1x64xf32> to vector<8x64xf32>
    %21 = arith.addf %18, %20 : vector<8x64xf32>
    %cst_21 = arith.constant 0.000000e+00 : f32
    %22 = vector.broadcast %cst_21 : f32 to vector<8x64xf32>
    %23 = arith.maximumf %21, %22 : vector<8x64xf32>
    %c0_22 = arith.constant 0 : index
    %c0_23 = arith.constant 0 : index
    %24 = vector.load %arg10[%c0_22, %c0_23] : memref<64x16xf32, #tpu.memory_space<vmem>>, vector<64x16xf32>
    %cst_24 = arith.constant dense<0.000000e+00> : vector<8x16xf32>
    %25 = tpu.matmul %23, %24, %cst_24 {dimension_numbers = #tpu.dot_dimension_numbers<[1], [0], [0], [1], [0, 0, 1, 1], [], []>} : vector<8x64xf32>, vector<64x16xf32>, vector<8x16xf32> -> vector<8x16xf32>
    %c0_25 = arith.constant 0 : index
    %c0_26 = arith.constant 0 : index
    %26 = vector.load %arg11[%c0_25, %c0_26] : memref<1x16xf32, #tpu.memory_space<vmem>>, vector<1x16xf32>
    %27 = vector.broadcast %26 : vector<1x16xf32> to vector<8x16xf32>
    %28 = arith.addf %25, %27 : vector<8x16xf32>
    %c0_27 = arith.constant 0 : index
    %c0_28 = arith.constant 0 : index
    %29 = vector.load %arg12[%c0_27, %c0_28] : memref<16x16xf32, #tpu.memory_space<vmem>>, vector<16x16xf32>
    %cst_29 = arith.constant dense<0.000000e+00> : vector<8x16xf32>
    %30 = tpu.matmul %0, %29, %cst_29 {dimension_numbers = #tpu.dot_dimension_numbers<[1], [0], [0], [1], [0, 0, 1, 1], [], []>} : vector<8x16xf32>, vector<16x16xf32>, vector<8x16xf32> -> vector<8x16xf32>
    %31 = arith.addf %28, %30 : vector<8x16xf32>
    %c0_30 = arith.constant 0 : index
    %c0_31 = arith.constant 0 : index
    %32 = vector.load %arg13[%c0_30, %c0_31] : memref<8x16xf32, #tpu.memory_space<vmem>>, vector<8x16xf32>
    tpu.vector_store %arg13[%c0_30, %c0_31], %31 {strides = array<i32>} : memref<8x16xf32, #tpu.memory_space<vmem>>, vector<8x16xf32>,
    return
  }
  func.func @transform_0(%arg0: i32) -> (i32, i32) {
    %c0_i32 = arith.constant 0 : i32
    %c0_i32_0 = arith.constant 0 : i32
    return %arg0, %c0_i32 : i32, i32
  }
  func.func @transform_1(%arg0: i32) -> (i32, i32) {
    %c0_i32 = arith.constant 0 : i32
    %c0_i32_0 = arith.constant 0 : i32
    return %arg0, %c0_i32 : i32, i32
  }
  func.func @transform_2(%arg0: i32) -> (i32, i32) {
    %c0_i32 = arith.constant 0 : i32
    %c0_i32_0 = arith.constant 0 : i32
    %c0_i32_1 = arith.constant 0 : i32
    return %c0_i32, %c0_i32_0 : i32, i32
  }
  func.func @transform_3(%arg0: i32) -> (i32, i32) {
    %c0_i32 = arith.constant 0 : i32
    %c0_i32_0 = arith.constant 0 : i32
    %c0_i32_1 = arith.constant 0 : i32
    return %c0_i32, %c0_i32_0 : i32, i32
  }
  func.func @transform_4(%arg0: i32) -> (i32, i32) {
    %c0_i32 = arith.constant 0 : i32
    %c0_i32_0 = arith.constant 0 : i32
    %c0_i32_1 = arith.constant 0 : i32
    return %c0_i32, %c0_i32_0 : i32, i32
  }
  func.func @transform_5(%arg0: i32) -> (i32, i32) {
    %c0_i32 = arith.constant 0 : i32
    %c0_i32_0 = arith.constant 0 : i32
    %c0_i32_1 = arith.constant 0 : i32
    return %c0_i32, %c0_i32_0 : i32, i32
  }
  func.func @transform_6(%arg0: i32) -> (i32, i32) {
    %c0_i32 = arith.constant 0 : i32
    %c0_i32_0 = arith.constant 0 : i32
    %c0_i32_1 = arith.constant 0 : i32
    return %c0_i32, %c0_i32_0 : i32, i32
  }
  func.func @transform_7(%arg0: i32) -> (i32, i32) {
    %c0_i32 = arith.constant 0 : i32
    %c0_i32_0 = arith.constant 0 : i32
    %c0_i32_1 = arith.constant 0 : i32
    return %c0_i32, %c0_i32_0 : i32, i32
  }
  func.func @transform_8(%arg0: i32) -> (i32, i32) {
    %c0_i32 = arith.constant 0 : i32
    %c0_i32_0 = arith.constant 0 : i32
    %c0_i32_1 = arith.constant 0 : i32
    return %c0_i32, %c0_i32_0 : i32, i32
  }
  func.func @transform_9(%arg0: i32) -> (i32, i32) {
    %c0_i32 = arith.constant 0 : i32
    %c0_i32_0 = arith.constant 0 : i32
    %c0_i32_1 = arith.constant 0 : i32
    return %c0_i32, %c0_i32_0 : i32, i32
  }
  func.func @transform_10(%arg0: i32) -> (i32, i32) {
    %c0_i32 = arith.constant 0 : i32
    %c0_i32_0 = arith.constant 0 : i32
    %c0_i32_1 = arith.constant 0 : i32
    return %c0_i32, %c0_i32_0 : i32, i32
  }
  func.func @transform_11(%arg0: i32) -> (i32, i32) {
    %c0_i32 = arith.constant 0 : i32
    %c0_i32_0 = arith.constant 0 : i32
    %c0_i32_1 = arith.constant 0 : i32
    return %c0_i32, %c0_i32_0 : i32, i32
  }
  func.func @transform_12(%arg0: i32) -> (i32, i32) {
    %c0_i32 = arith.constant 0 : i32
    %c0_i32_0 = arith.constant 0 : i32
    return %arg0, %c0_i32 : i32, i32
  }
}

</mosaic_0001>

<bundles_post_ra>
// kernel: tpu_custom_call.1
= control target key start
LH: loop header
LB: loop body
LE: loop exit
PB: predicated region body
PF: predicated region fallthrough
CT: control target
= control target key end

     0   :  { %v777_v3 = vmov 0.0|0.0   ;;  %vm778_vm0 = vmmov 0   ;;  %v779_v7 = vmov 0.0   ;;  %s1015_s0 = inlined_call_operand.vmem [shape: f32[8,16], index: 0, kind: input, shape index: {}]   ;;  %s1016_s1 = inlined_call_operand.vmem [shape: f32[8,16], index: 1, kind: input, shape index: {}]   ;;  %s1017_s2 = inlined_call_operand.vmem [shape: f32[16,32], index: 2, kind: input, shape index: {}]   ;;  %s1018_s3 = inlined_call_operand.vmem [shape: f32[16,32], index: 3, kind: input, shape index: {}]   ;;  %s1019_s4 = inlined_call_operand.vmem [shape: f32[1,32], index: 4, kind: input, shape index: {}]   ;;  %s1020_s5 = inlined_call_operand.vmem [shape: f32[32,128], index: 5, kind: input, shape index: {}]   ;;  %s1021_s6 = inlined_call_operand.vmem [shape: f32[1,128], index: 6, kind: input, shape index: {}]   ;;  %s1022_s7 = inlined_call_operand.vmem [shape: f32[128,64], index: 7, kind: input, shape index: {}]   ;;  %s1023_s8 = inlined_call_operand.vmem [shape: f32[1,64], index: 8, kind: input, shape index: {}]   ;;  %s1024_s9 = inlined_call_operand.vmem [shape: f32[64,16], index: 9, kind: input, shape index: {}]   ;;  %s1025_s10 = inlined_call_operand.vmem [shape: f32[1,16], index: 10, kind: input, shape index: {}]   ;;  %s1026_s11 = inlined_call_operand.vmem [shape: f32[16,16], index: 11, kind: input, shape index: {}]   ;;  %s1027_s12 = inlined_call_operand.hbm [shape: f32[8,16], index: 12, kind: output, shape index: {}]  }
   0x1   :  { %v46_v0 = vld [vmem:[%s1018_s3] sm:$0xff]  ;;  %v47_v1 = vld [vmem:[%s1018_s3 + $0x8] sm:$0xff]  ;;  %695 = vmatprep.subr.bf16.mxu0 %v777_v3  ;;  %698 = vmatprep.subr.bf16.mxu1 %v777_v3 }
   0x2   :  { %v43_v2 = vld [vmem:[%s1017_s2] sm:$0xff]  ;;  %v696_v4 = vpack.c.bf16 %v47_v1, %v46_v0  ;;  %v44_v5 = vld [vmem:[%s1017_s2 + $0x8] sm:$0xff]  ;;  %613 = vmatprep.mubr.msk.f32.mxu0 %vm778_vm0, %v779_v7  ;;  %620 = vmatprep.mubr.msk.f32.mxu1 %vm778_vm0, %v779_v7 }
   0x3   :  { %v699_v6 = vpack.c.bf16 %v44_v5, %v43_v2  ;;  %v203_v8 = vld [vmem:[%s1020_s5] sm:$0xff]  ;;  %v204_v9 = vld [vmem:[%s1020_s5 + $0x8] sm:$0xff] }
   0x4   :  { %17 = vsyncpa [#allocation3], 0  ;;  %697 = vmatpush3.bf16.msra.mxu0 %v696_v4  ;;  %v45_v10 = vld [vmem:[%s1016_s1] sm:$0xff]  ;;  %vm48_vm1 = vcmask 130048   ;;  %v702_v11 = vpack.c.bf16 %v204_v9, %v203_v8  ;;  %v205_v13 = vld [vmem:[%s1020_s5 + $0x10] sm:$0xff]  ;;  %vm214_vm2 = vcmask 261120  }
   0x5   :  { %700 = vmatpush3.bf16.msra.mxu1 %v699_v6  ;;  %v876_v12 = vld [vmem:[%s1015_s0] sm:$0xff]  ;;  %701 = vmatprep.subr.bf16.mxu0 %v777_v3  ;;  %v206_v14 = vld [vmem:[%s1020_s5 + $0x18] sm:$0xff]  ;;  %v290_v17 = vld [vmem:[%s1022_s7 + $0x8] sm:$0xff]  ;;  %vm398_vm3 = vcmask 523264   ;;  %s780_s27 = smov [#allocation2]  }
   0x6   :  { %707 = vmatprep.subr.bf16.mxu1 %v777_v3  ;;  %v705_v15 = vpack.c.bf16 %v206_v14, %v205_v13  ;;  %v289_v16 = vld [vmem:[%s1022_s7] sm:$0xff]  ;;  %v291_v18 = vld [vmem:[%s1022_s7 + $0x10] sm:$0xff]  ;;  %v292_v20 = vld [vmem:[%s1022_s7 + $0x18] sm:$0xff] }
   0x7   :  { %614 = vmatmul.mubr.msk.f32.vlgmr.msra.gmra.mrb[0].mxu0 %vm48_vm1, %v45_v10  ;;  %v708_v19 = vpack.c.bf16 %v290_v17, %v289_v16  ;;  %v711_v21 = vpack.c.bf16 %v292_v20, %v291_v18  ;;  %v293_v22 = vld [vmem:[%s1022_s7 + $0x20] sm:$0xff]  ;;  %v294_v23 = vld [vmem:[%s1022_s7 + $0x28] sm:$0xff]  ;;  %v295_v25 = vld [vmem:[%s1022_s7 + $0x30] sm:$0xff] }
   0x8   :  { %621 = vmatmul.mubr.msk.f32.vlgmr.msra.gmra.mrb[0].mxu1 %vm48_vm1, %v876_v12  ;;  %703 = vmatpush3.bf16.msra.mxu0 %v702_v11  ;;  %v714_v24 = vpack.c.bf16 %v294_v23, %v293_v22  ;;  %v296_v26 = vld [vmem:[%s1022_s7 + $0x38] sm:$0xff]  ;;  %v297_v28 = vld [vmem:[%s1022_s7 + $0x40] sm:$0xff]  ;;  %v298_v29 = vld [vmem:[%s1022_s7 + $0x48] sm:$0xff] }
   0x9   :  { %704 = vmatprep.subr.bf16.mxu0 %v777_v3  ;;  %631 = vmatprep.mubr.msk.f32.mxu0 %vm778_vm0, %v779_v7  ;;  %v717_v27 = vpack.c.bf16 %v296_v26, %v295_v25  ;;  %v720_v30 = vpack.c.bf16 %v298_v29, %v297_v28  ;;  %v299_v31 = vld [vmem:[%s1022_s7 + $0x50] sm:$0xff]  ;;  %v300_v32 = vld [vmem:[%s1022_s7 + $0x58] sm:$0xff]  ;;  %v301_v34 = vld [vmem:[%s1022_s7 + $0x60] sm:$0xff] }
   0xa   :  { %666 = vmatprep.mubr.msk.f32.mxu1 %vm778_vm0, %v779_v7  ;;  %709 = vmatpush3.bf16.msra.mxu1 %v708_v19  ;;  %v723_v33 = vpack.c.bf16 %v300_v32, %v299_v31  ;;  %v302_v35 = vld [vmem:[%s1022_s7 + $0x68] sm:$0xff]  ;;  %v562_v39 = vld [vmem:[%s1019_s4] ss:$0 sm:$0xff]  ;;  %v303_v44 = vld [vmem:[%s1022_s7 + $0x70] sm:$0xff] }
   0xb   :  { %710 = vmatprep.subr.bf16.mxu1 %v777_v3  ;;  %v726_v36 = vpack.c.bf16 %v302_v35, %v301_v34  ;;  %v304_v45 = vld [vmem:[%s1022_s7 + $0x78] sm:$0xff]  ;;  %v383_v47 = vld [vmem:[%s1024_s9] sm:$0xff]  ;;  %v384_v48 = vld [vmem:[%s1024_s9 + $0x8] sm:$0xff] }
   0xc   :  { %706 = vmatpush3.bf16.msra.mxu0 %v705_v15  ;;  %v729_v46 = vpack.c.bf16 %v304_v45, %v303_v44  ;;  %v385_v49 = vld [vmem:[%s1024_s9 + $0x10] sm:$0xff]  ;;  %v732_v50 = vpack.c.bf16 %v384_v48, %v383_v47  ;;  %v386_v51 = vld [vmem:[%s1024_s9 + $0x18] sm:$0xff]  ;;  %v387_v53 = vld [vmem:[%s1024_s9 + $0x20] sm:$0xff] }
   0xd   :  { %731 = vmatprep.subr.bf16.mxu0 %v777_v3  ;;  %v735_v52 = vpack.c.bf16 %v386_v51, %v385_v49  ;;  %v388_v54 = vld [vmem:[%s1024_s9 + $0x28] sm:$0xff]  ;;  %v563_v56 = vld [vmem:[%s1021_s6] ss:$0 sm:$0xff]  ;;  %v389_v61 = vld [vmem:[%s1024_s9 + $0x30] sm:$0xff] }
   0xe   :  { %712 = vmatpush3.bf16.msra.mxu1 %v711_v21  ;;  %v738_v55 = vpack.c.bf16 %v388_v54, %v387_v53  ;;  %v390_v62 = vld [vmem:[%s1024_s9 + $0x38] sm:$0xff]  ;;  %v565_v0 = vld [vmem:[%s1023_s8] ss:$0 sm:$0xff]  ;;  %v473_v2 = vld [vmem:[%s1026_s11 + $0x8] sm:$0xff] }
   0xf   :  { %713 = vmatprep.subr.bf16.mxu1 %v777_v3  ;;  %v741_v63 = vpack.c.bf16 %v390_v62, %v389_v61  ;;  %v472_v1 = vld [vmem:[%s1026_s11] sm:$0xff]  ;;  %s552_s11 = sshll.u32 %s780_s27, 4  ;;  %s553_s11 = int_to_ptr.vmem [resolvable:$true] %s552_s11 }
  0x10   :  { %v744_v8 = vpack.c.bf16 %v473_v2, %v472_v1  ;;  %s753_s28 = scalar_lea.vmem %s553_s11, 128  ;;  %p758_p1 = scmp.lt.s32.totalorder %s553_s11, %s553_s11 }
  0x11   :  { %p754_p0 = scmp.ne.s32.totalorder %s553_s11, %s753_s28  ;;  %p759_p2 = scmp.lt.s32.totalorder %s753_s28, %s753_s28 }
  0x12   :  { %715 = vmatpush3.bf16.msra.mxu1 %v714_v24 }
  0x13   :  { %716 = vmatprep.subr.bf16.mxu1 %v777_v3  ;;  %p760_p3 = por %p759_p2, %p758_p1 }
  0x15   :  { %p761_p4 = pnand %p760_p3, %p754_p0 }
  0x16   :  { %718 = vmatpush3.bf16.msra.mxu1 %v717_v27 }
  0x17   :  { %719 = vmatprep.subr.bf16.mxu1 %v777_v3 }
  0x1a   :  { %721 = vmatpush3.bf16.msra.mxu1 %v720_v30 }
  0x1b   :  { %722 = vmatprep.subr.bf16.mxu1 %v777_v3 }
  0x1e   :  { %724 = vmatpush3.bf16.msra.mxu1 %v723_v33 }
  0x1f   :  { %725 = vmatprep.subr.bf16.mxu1 %v777_v3 }
  0x22   :  { %727 = vmatpush3.bf16.msra.mxu1 %v726_v36 }
  0x23   :  { %728 = vmatprep.subr.bf16.mxu1 %v777_v3 }
  0x26   :  { %730 = vmatpush3.bf16.msra.mxu1 %v729_v46 }
  0xda   :  { %v118_v37 = vpop.f32.mrb[0].mxu0 }
  0xdb   :  { %v191_v38 = vpop.f32.mrb[0].mxu1  ;;  %v615_v40 = vpop.f32.mrb[1].mxu0 }
  0xdc   :  { %v192_v41 = vadd.f32 %v191_v38, %v118_v37  ;;  %v622_v42 = vpop.f32.mrb[1].mxu1 }
  0xde   :  { %v202_v43 = vadd.f32 %v562_v39, %v192_v41 }
  0xe0   :  { %632 = vmatmul.mubr.msk.f32.vlgmr.msra.gmra.mrb[2].mxu0 %vm214_vm2, %v202_v43 }
  0xe1   :  { %685 = vmatprep.mubr.msk.f32.mxu0 %vm778_vm0, %v779_v7  ;;  %733 = vmatpush3.bf16.msra.mxu0 %v732_v50 }
  0xe2   :  { %734 = vmatprep.subr.bf16.mxu0 %v777_v3 }
  0xe5   :  { %736 = vmatpush3.bf16.msra.mxu0 %v735_v52 }
  0xe6   :  { %737 = vmatprep.subr.bf16.mxu0 %v777_v3 }
  0xe9   :  { %739 = vmatpush3.bf16.msra.mxu0 %v738_v55 }
  0xea   :  { %740 = vmatprep.subr.bf16.mxu0 %v777_v3 }
  0xed   :  { %742 = vmatpush3.bf16.msra.mxu0 %v741_v63 }
  0xee   :  { %743 = vmatprep.subr.bf16.mxu0 %v777_v3  ;;  %v566_v3 = vld [vmem:[%s1025_s10] ss:$0 sm:$0xff] }
 0x1b3   :  { %v284_v57 = vpop.f32.mrb[2].mxu0 }
 0x1b4   :  { %v285_v58 = vadd.f32 %v563_v56, %v284_v57  ;;  %v633_v59 = vpop.f32.mrb[3].mxu0 }
 0x1b6   :  { %v288_v60 = vmax.f32 %v285_v58, 0.0 }
 0x1b8   :  { %667 = vmatmul.mubr.f32.vlgmr.msra.gmra.mrb[2].mxu1 %v288_v60 }
 0x28b   :  { %v378_v4 = vpop.f32.mrb[2].mxu1 }
 0x28c   :  { %v379_v5 = vadd.f32 %v565_v0, %v378_v4  ;;  %v668_v6 = vpop.f32.mrb[3].mxu1 }
 0x28e   :  { %v382_v9 = vmax.f32 %v379_v5, 0.0 }
 0x290   :  { %686 = vmatmul.mubr.msk.f32.vlgmr.msra.gmra.mrb[4].mxu0 %vm398_vm3, %v382_v9 }
 0x291   :  { %745 = vmatpush3.bf16.msra.mxu0 %v744_v8  ;;  %692 = vmatprep.mubr.msk.f32.mxu0 %vm778_vm0, %v779_v7 }
 0x298   :  { %693 = vmatmul.mubr.msk.f32.vlgmr.msra.gmra.mrb[4].mxu0 %vm48_vm1, %v876_v12 }
 0x36b   :  { %v540_v10 = vpop.f32.mrb[4].mxu0 }
 0x36c   :  { %v746_v11 = vadd.f32 %v566_v3, %v540_v10  ;;  %v694_v13 = vpop.f32.mrb[5].mxu0 }
 0x36e   :  { %545 = vst.msk [vmem:[#allocation2] sm:$0xff] %vm48_vm1, %v746_v11 }
 0x36f   :  { %764 = shalt.err (!%p761_p4)
}
 0x370   :  { %s765_s29 = scalar_lea.hbm %s1027_s12, 128 }
 0x371   :  { %p766_p5 = scmp.ne.s32.totalorder %s1027_s12, %s765_s29  ;;  %p769_p6 = scmp.lt.u32.totalorder %s765_s29, %s1027_s12 }
 0x373   :  { %p771_p7 = pnand %p769_p6, %p766_p5 }
 0x375   :  { %774 = shalt.err (!%p771_p7)
}
 0x376   :  { %555 = dma.vmem_to_hbm [thread:$0]  %s553_s11, 128, %s1027_s12, [#allocation3]  }
 0x377   :  { %775 = dma.done.wait [#allocation3], 128  }
 0x378   :  { %776 = vsyncadd [#allocation3], 4294967168 }
 0x379   :  { %559 = vsyncpa [#allocation3], 1 }

</bundles_post_ra>
